<compile_context>
chip_gen: v6e
topology: v6e:2x2x1
jax: 0.10.0
libtpu: 0.0.40
codegen_flags: <defaults>
</compile_context>

<pallas_src>
import jax
import jax.numpy as jnp
from jax.experimental import pallas as pl
from jax.experimental.pallas import tpu as pltpu

EPS = 1e-5      # nn.BatchNorm3d default eps
SLOPE = 0.01    # nn.LeakyReLU default negative_slope
CIN_P = 8       # input channels zero-padded to one full sublane tile

_ROLL_LIKE_JNP = None   # set by _probe_roll_convention(); None -> assume jnp.roll


def _leaky(v):
    return jnp.where(v >= 0, v, SLOPE * v)


def _round_up(x, m):
    return (x + m - 1) // m * m


def _probe_roll_convention():
    """One-vreg self-check of pltpu.roll's rotate direction (robustness guard)."""
    global _ROLL_LIKE_JNP
    x = jnp.broadcast_to(jnp.arange(128, dtype=jnp.float32), (8, 128))

    def k(x_ref, o_ref):
        o_ref[...] = pltpu.roll(x_ref[...], 1, axis=1)

    y = pl.pallas_call(k, out_shape=jax.ShapeDtypeStruct((8, 128), jnp.float32))(x)
    _ROLL_LIKE_JNP = bool(y[0, 0] == 127.0)   # jnp.roll convention: out[0] = in[-1]


def _roll_left(v, s, width):
    """out[..., j] = v[..., (j + s) % width] via an XLU lane rotation."""
    like_jnp = True if _ROLL_LIKE_JNP is None else _ROLL_LIKE_JNP
    amount = (width - s) % width if like_jnp else s
    return pltpu.roll(v, amount, axis=1)


def res_block_dropout_forward(x_ncdhw, params):
    x = x_ncdhw.astype(jnp.float32)
    N, Cin, D, H, W = x.shape
    Cmid = params["w1"].shape[-1]
    Cout = params["w2"].shape[-1]
    assert Cin + 1 <= CIN_P and Cmid == CIN_P, "layout assumes Cin < 8 and Cmid == 8"

    HW = H * W
    P = D * HW                                  # flattened spatial size per sample
    MAXOFF = 2 * HW + 2 * W + 2                 # offset of tap (kd,kh,kw)=(2,2,2)
    PE = _round_up(P + 2 * HW, 128)             # h1 width (covers conv2 base slabs)
    PX = _round_up(PE + 2 * HW, 128)            # padded-x width (conv1 base slabs)
    K1 = 27 * CIN_P                             # 216 stacked conv1 rows
    K2 = 27 * Cmid + CIN_P                      # 224 stacked conv2 + skip rows

    # Roll-wrap / junk-column safety: everything a VALID output column (one that
    # survives the final crop) reads must be untouched by the circular wrap.
    p_valid = (D - 5) * HW + (H - 5) * W + (W - 5)   # last valid output column
    assert HW % 128 == 0                             # base-slab loads lane aligned
    assert p_valid + MAXOFF < P                      # deepest real-x read in range
    assert p_valid + 2 * W + 2 < P                   # conv2/skip rolls never wrap
    assert p_valid + MAXOFF + 2 * W + 2 < PE         # conv1 rolls never wrap

    # ---- host-side folding: BN(eval) + all biases into the weights ----------
    s1 = params["g1"].reshape(-1) / jnp.sqrt(params["rv1"].reshape(-1) + EPS)
    s2 = params["g2"].reshape(-1) / jnp.sqrt(params["rv2"].reshape(-1) + EPS)
    b1f = (params["b1"].reshape(-1) - params["rm1"].reshape(-1)) * s1 \
        + params["bt1"].reshape(-1)
    b2f = (params["b2"].reshape(-1) - params["rm2"].reshape(-1)) * s2 \
        + params["bt2"].reshape(-1)

    w1p = jnp.zeros((3, 3, 3, CIN_P, Cmid), jnp.float32)
    w1p = w1p.at[:, :, :, :Cin, :].set(params["w1"] * s1)
    w1p = w1p.at[0, 0, 0, Cin, :].set(b1f)            # bias rides the ones channel
    w1t = w1p.reshape(K1, Cmid).T                      # (Cmid, 216)

    skp = jnp.zeros((CIN_P, Cout), jnp.float32)
    skp = skp.at[:Cin, :].set(params["wsk"])
    skp = skp.at[Cin, :].set(b2f + params["bsk"].reshape(-1))
    w2t = jnp.concatenate([(params["w2"] * s2).reshape(27 * Cmid, Cout), skp],
                          axis=0).T                    # (Cout, 224)

    # Flattened input: channels on sublanes, padded to 8 (4 real channels, one
    # all-ones channel carrying the folded biases, 3 zeros); spatial on lanes.
    xflat = jnp.pad(x.reshape(N, Cin, P), ((0, 0), (0, 0), (0, PX - P)))
    xp = jnp.concatenate(
        [xflat,
         jnp.ones((N, 1, PX), jnp.float32),
         jnp.zeros((N, CIN_P - Cin - 1, PX), jnp.float32)], axis=1)   # (N, 8, PX)

    def kernel(xp_ref, w1_ref, w2_ref, o_ref, rhs1_ref, h1_ref, rhs2_ref):
        # conv1 taps: one lane-aligned base load per kd plane, kh/kw shifts via
        # in-register lane rolls, full-(8,128)-tile stores into the patch matrix.
        for kd in range(3):
            base = xp_ref[0, :, kd * HW:kd * HW + PE]
            for kh in range(3):
                for kw in range(3):
                    t = kd * 9 + kh * 3 + kw
                    s = kh * W + kw
                    slab = base if s == 0 else _roll_left(base, s, PE)
                    rhs1_ref[t * CIN_P:(t + 1) * CIN_P, :] = slab
        # conv1 + folded BN1 + bias (ones channel) + LeakyReLU: one MXU matmul.
        h1_ref[...] = _leaky(jnp.dot(w1_ref[...], rhs1_ref[...],
                                     preferred_element_type=jnp.float32))

        # conv2 taps from h1 (same aligned-base + roll scheme; Cmid=8 rows) ...
        for kd in range(3):
            base = h1_ref[:, kd * HW:kd * HW + P]
            for kh in range(3):
                for kw in range(3):
                    t = kd * 9 + kh * 3 + kw
                    s = kh * W + kw
                    slab = base if s == 0 else _roll_left(base, s, P)
                    rhs2_ref[t * Cmid:(t + 1) * Cmid, :] = slab
        # ... plus the cropped-x channels for the fused 1x1x1 skip conv (the
        # ones channel in this block carries the folded conv2 + skip bias).
        rhs2_ref[27 * Cmid:, :] = _roll_left(xp_ref[0, :, 2 * HW:2 * HW + P],
                                             2 * W + 2, P)
        # conv2 + BN2 + skip + bias + trailing LeakyReLU: one MXU matmul.
        o_ref[0, :, :] = _leaky(jnp.dot(w2_ref[...], rhs2_ref[...],
                                        preferred_element_type=jnp.float32)
                                ).astype(o_ref.dtype)

    out_flat = pl.pallas_call(
        kernel,
        out_shape=jax.ShapeDtypeStruct((N, Cout, P), jnp.float32),
        grid=(N,),
        in_specs=[
            pl.BlockSpec((1, CIN_P, PX), lambda n: (n, 0, 0)),
            pl.BlockSpec((Cmid, K1), lambda n: (0, 0)),
            pl.BlockSpec((Cout, K2), lambda n: (0, 0)),
        ],
        out_specs=pl.BlockSpec((1, Cout, P), lambda n: (n, 0, 0)),
        scratch_shapes=[
            pltpu.VMEM((K1, PE), jnp.float32),    # stacked conv1 taps  (~3.8 MiB)
            pltpu.VMEM((Cmid, PE), jnp.float32),  # h1: never round-trips HBM
            pltpu.VMEM((K2, P), jnp.float32),     # stacked conv2 taps + skip (~3.5 MiB)
        ],
        compiler_params=pltpu.CompilerParams(
            dimension_semantics=("parallel",),    # N=2 steps -> both v7x TCs busy
            vmem_limit_bytes=32 * 1024 * 1024,
        ),
    )(xp, w1t, w2t)

    # Only positions with d,h,w <= D-5 are valid conv2 outputs; crop the junk
    # border columns of the flattened layout here (a 12-lane-wide in-kernel
    # store would be masked and slower -- per review, leave the crop outside).
    return out_flat.reshape(N, Cout, D, H, W)[:, :, :D - 4, :H - 4, :W - 4]


# ----------------------------- pure-JAX reference -----------------------------

def _ref_forward(x, params):
    def conv(v, w_khwio, b):
        w = jnp.transpose(w_khwio, (4, 3, 0, 1, 2))   # (kd,kh,kw,ci,co) -> OIDHW
        out = jax.lax.conv_general_dilated(
            v, w, (1, 1, 1), "VALID",
            dimension_numbers=("NCDHW", "OIDHW", "NCDHW"))
        return out + b.reshape(1, -1, 1, 1, 1)

    def bn(v, g, bt, rm, rv):
        g, bt, rm, rv = (a.reshape(1, -1, 1, 1, 1) for a in (g, bt, rm, rv))
        return (v - rm) * g / jnp.sqrt(rv + EPS) + bt

    h = _leaky(bn(conv(x, params["w1"], params["b1"]),
                  params["g1"], params["bt1"], params["rm1"], params["rv1"]))
    h = bn(conv(h, params["w2"], params["b2"]),
           params["g2"], params["bt2"], params["rm2"], params["rv2"])
    y = jnp.einsum("ncdhw,co->nodhw", x[:, :, 2:-2, 2:-2, 2:-2], params["wsk"])
    y = y + params["bsk"].reshape(1, -1, 1, 1, 1)
    return _leaky(h + y)


# ------------------------------------ main ------------------------------------

if __name__ == "__main__":
    N, Cin, Cout, S = 2, 4, 8, 16
    Cmid = max(Cin, Cout)            # mid_chan default in ConvBlockDropout

    key = jax.random.PRNGKey(0)
    keys = jax.random.split(key, 16)

    def u(k, shape, lo=-0.3, hi=0.3):
        return jax.random.uniform(k, shape, jnp.float32, lo, hi)

    params = {
        # Conv3d(in, mid, 3)
        "w1": u(keys[0], (3, 3, 3, Cin, Cmid)), "b1": u(keys[1], (1, Cmid)),
        # BatchNorm3d(mid): gamma, beta, running_mean, running_var
        "g1": u(keys[2], (1, Cmid), 0.5, 1.5), "bt1": u(keys[3], (1, Cmid), -0.1, 0.1),
        "rm1": u(keys[4], (1, Cmid), -0.1, 0.1), "rv1": u(keys[5], (1, Cmid), 0.5, 1.5),
        # Conv3d(mid, out, 3)
        "w2": u(keys[6], (3, 3, 3, Cmid, Cout)), "b2": u(keys[7], (1, Cout)),
        # BatchNorm3d(out)
        "g2": u(keys[8], (1, Cout), 0.5, 1.5), "bt2": u(keys[9], (1, Cout), -0.1, 0.1),
        "rm2": u(keys[10], (1, Cout), -0.1, 0.1), "rv2": u(keys[11], (1, Cout), 0.5, 1.5),
        # skip Conv3d(in, out, 1)
        "wsk": u(keys[12], (Cin, Cout)), "bsk": u(keys[13], (1, Cout)),
    }

    x = jax.random.normal(keys[14], (N, Cin, S, S, S), jnp.float32)   # NCDHW

    _probe_roll_convention()          # resolve pltpu.roll direction before tracing

    out = jax.jit(res_block_dropout_forward)(x, params)
    out = jax.block_until_ready(out)

    assert out.shape == (N, Cout, S - 4, S - 4, S - 4), out.shape
    ref = _ref_forward(x, params)
    err = float(jnp.max(jnp.abs(out - ref)))
    assert jnp.allclose(out, ref, rtol=1e-3, atol=1e-3), err

    print("KERNEL_OK")
</pallas_src>

<mosaic_0001>
module attributes {stable_mosaic.version = 11 : i64} {
  func.func @k(%arg0: memref<8x128xf32, #tpu.memory_space<vmem>>, %arg1: memref<8x128xf32, #tpu.memory_space<vmem>>) attributes {dimension_semantics = [], scalar_prefetch = 0 : i64, scratch_operands = 0 : i64, tpu.core_type = #tpu.core_type<tc>} {
    %c0 = arith.constant 0 : index
    %c0_0 = arith.constant 0 : index
    %0 = vector.load %arg0[%c0, %c0_0] : memref<8x128xf32, #tpu.memory_space<vmem>>, vector<8x128xf32>
    %c1_i32 = arith.constant 1 : i32
    %1 = tpu.dynamic_rotate %0 by %c1_i32 dim 1 : vector<8x128xf32>, i32 -> vector<8x128xf32>
    %c0_1 = arith.constant 0 : index
    %c0_2 = arith.constant 0 : index
    %2 = vector.load %arg1[%c0_1, %c0_2] : memref<8x128xf32, #tpu.memory_space<vmem>>, vector<8x128xf32>
    tpu.vector_store %arg1[%c0_1, %c0_2], %1 {strides = array<i32>} : memref<8x128xf32, #tpu.memory_space<vmem>>, vector<8x128xf32>,
    return
  }
}

</mosaic_0001>

<bundles_post_ra>
// kernel: tpu_custom_call.1
= control target key start
LH: loop header
LB: loop body
LE: loop exit
PB: predicated region body
PF: predicated region fallthrough
CT: control target
= control target key end

     0   :  { %6 = vsyncpa [#allocation3], 0  ;;  %s106_s0 = inlined_call_operand.hbm [shape: f32[8,128], index: 0, kind: input, shape index: {}]   ;;  %s107_s1 = inlined_call_operand.hbm [shape: f32[8,128], index: 1, kind: output, shape index: {}]  }
   0x1   :  { %7 = vsyncpa [#allocation4], 0  ;;  %s87_s6 = smov [#allocation2]  }
   0x2   :  { %s14_s7 = sshll.u32 %s87_s6, 4  ;;  %s15_s7 = int_to_ptr.vmem [resolvable:$true] %s14_s7 }
   0x3   :  { %s51_s8 = scalar_lea.vmem %s15_s7, 128  ;;  %p56_p1 = scmp.lt.s32.totalorder %s15_s7, %s15_s7 }
   0x4   :  { %p52_p0 = scmp.ne.s32.totalorder %s15_s7, %s51_s8  ;;  %p57_p2 = scmp.lt.s32.totalorder %s51_s8, %s51_s8 }
   0x6   :  { %p58_p3 = por %p57_p2, %p56_p1 }
   0x8   :  { %p59_p4 = pnand %p58_p3, %p52_p0 }
   0xa   :  { %62 = shalt.err (!%p59_p4)
}
   0xb   :  { %17 = dma.hbm_to_vmem [thread:$0]  %s106_s0, 128, %s15_s7, [#allocation3]  }
   0xc   :  { %83 = dma.done.wait [#allocation3], 128  }
   0xd   :  { %84 = vsyncadd [#allocation3], 4294967168  ;;  %v21_v0 = vld [vmem:[#allocation2] sm:$0xff]  ;;  %s88_s11 = smov 1   ;;  %s89_s12 = smov [#allocation5]  }
   0xe   :  { %22 = vrot.lane.b32.xlu0 %v21_v0, %s88_s11  ;;  %s31_s13 = sshll.u32 %s89_s12, 4  ;;  %s32_s13 = int_to_ptr.vmem [resolvable:$true] %s31_s13 }
   0xf   :  { %s63_s14 = scalar_lea.vmem %s32_s13, 128  ;;  %p68_p6 = scmp.lt.s32.totalorder %s32_s13, %s32_s13 }
  0x10   :  { %p64_p5 = scmp.ne.s32.totalorder %s32_s13, %s63_s14  ;;  %p69_p7 = scmp.lt.s32.totalorder %s63_s14, %s63_s14 }
  0x12   :  { %p70_p8 = por %p69_p7, %p68_p6 }
  0x14   :  { %p71_p9 = pnand %p70_p8, %p64_p5 }
  0x80   :  { %v23_v1 = vpop.permute.xlu0 %22 }
  0x81   :  { %24 = vst [vmem:[#allocation5] sm:$0xff] %v23_v1 }
  0x82   :  { %74 = shalt.err (!%p71_p9)
}
  0x83   :  { %34 = dma.vmem_to_hbm [thread:$0]  %s32_s13, 128, %s107_s1, [#allocation4]  }
  0x84   :  { %85 = dma.done.wait [#allocation4], 128  }
  0x85   :  { %86 = vsyncadd [#allocation4], 4294967168 }
  0x86   :  { %38 = vsyncpa [#allocation3], 1 }
  0x87   :  { %39 = vsyncpa [#allocation4], 1 }

</bundles_post_ra>
